<compile_context>
chip_gen: v7x
topology: tpu7x:2x2x1
jax: 0.10.0
libtpu: 0.0.40
codegen_flags: <defaults>
</compile_context>

<pallas_src>
import jax
import jax.numpy as jnp
from jax.experimental import pallas as pl
from jax.experimental.pallas import tpu as pltpu

M_TRANS = 1                        # translational coordinates (r)
N_ANG = 1                          # angular coordinates (theta)
D_F = M_TRANS + N_ANG              # degrees of freedom = 2
H_PARAMS = M_TRANS + 2 * N_ANG     # embedded input size = 3  (r, cos, sin)
N_NEURONS = 32
N_OFF = D_F * (D_F - 1) // 2       # lower-triangular off-diagonal entries = 1
HEAD_OUT = D_F + N_OFF + 1         # fused head rows: diag_r, diag_th, off, V
DIAG_SHIFT = 0.1                   # keeps H = L L^T positive definite
BT_MAX = 1024                      # batch tile (lane axis); multiple of 128


def _softplus(z):
    return jnp.maximum(z, 0.0) + jnp.log(1.0 + jnp.exp(-jnp.abs(z)))


def _sigmoid(z):
    return 1.0 / (1.0 + jnp.exp(-z))


def lode_rt_kernel(x_ref, w0t_ref, b0_ref, w1t_ref, b1_ref, wht_ref, bh_ref,
                   out_ref):
    # x rows: (q_r, q_theta, qd_r, qd_theta, tau_r, tau_theta), batch on lanes
    x = x_ref[...]                                      # [6, BT]
    bt = x.shape[1]

    q_r = x[0:1, :]
    q_th = x[1:2, :]
    qd0 = x[2:3, :]
    qd1 = x[3:4, :]
    tau0 = x[4:5, :]
    tau1 = x[5:6, :]

    # ---- angle embedding: new_q = (r, cos(theta), sin(theta)) ----
    c_th = jnp.cos(q_th)
    s_th = jnp.sin(q_th)
    new_q = jnp.concatenate([q_r, c_th, s_th], axis=0)  # [3, BT]

    # ---- layer 0: value + analytic tangents wrt (r, theta) ----
    w0t = w0t_ref[...]                                  # [32, 3]
    h = jnp.tanh(jnp.dot(w0t, new_q, preferred_element_type=jnp.float32)
                 + b0_ref[...])                         # [32, BT]
    sech2 = 1.0 - h * h
    # d new_q/d r = (1,0,0);  d new_q/d theta = (0,-sin,cos)  -> no matmuls
    dh0 = sech2 * w0t[:, 0:1]
    dh1 = sech2 * (w0t[:, 1:2] * (-s_th) + w0t[:, 2:3] * c_th)

    # ---- layer 1: single fused matmul for value + both tangents ----
    hs = jnp.concatenate([h, dh0, dh1], axis=1)         # [32, 3*BT]
    z1s = jnp.dot(w1t_ref[...], hs, preferred_element_type=jnp.float32)
    h2 = jnp.tanh(z1s[:, :bt] + b1_ref[...])
    sech2_2 = 1.0 - h2 * h2
    dh2_0 = sech2_2 * z1s[:, bt:2 * bt]
    dh2_1 = sech2_2 * z1s[:, 2 * bt:]

    # ---- fused heads (diag | off-diag | potential): value + tangents ----
    h2s = jnp.concatenate([h2, dh2_0, dh2_1], axis=1)   # [32, 3*BT]
    zs = jnp.dot(wht_ref[...], h2s, preferred_element_type=jnp.float32)
    zv = zs[:, :bt] + bh_ref[...]                       # [4, BT]
    dz0 = zs[:, bt:2 * bt]                              # d/dq_r
    dz1 = zs[:, 2 * bt:]                                # d/dq_theta

    z_diag = zv[0:2, :]
    sig = _sigmoid(z_diag)
    l_diag = _softplus(z_diag) + DIAG_SHIFT
    L00 = l_diag[0:1, :]
    L11 = l_diag[1:2, :]
    L10 = zv[2:3, :]
    # potential value zv[3:4] is unused (only its gradient enters dynamics)

    dL00 = (sig[0:1, :] * dz0[0:1, :], sig[0:1, :] * dz1[0:1, :])
    dL11 = (sig[1:2, :] * dz0[1:2, :], sig[1:2, :] * dz1[1:2, :])
    dL10 = (dz0[2:3, :], dz1[2:3, :])
    g0 = dz0[3:4, :]                                    # dV/dq_r
    g1 = dz1[3:4, :]                                    # dV/dq_theta

    # ---- H = L L^T (lower triangle, symmetric) and dH/dq_k ----
    H00 = L00 * L00
    H01 = L10 * L00
    H11 = L10 * L10 + L11 * L11

    dH00 = tuple(2.0 * L00 * dL00[k] for k in range(2))
    dH01 = tuple(dL10[k] * L00 + L10 * dL00[k] for k in range(2))
    dH11 = tuple(2.0 * (L10 * dL10[k] + L11 * dL11[k]) for k in range(2))

    # ---- Coriolis:  c_i = sum_{k,j} dH_ij/dq_k qd_j qd_k
    #                       - 0.5 sum_{j,l} dH_jl/dq_i qd_j qd_l ----
    qd00 = qd0 * qd0
    qd01 = qd0 * qd1
    qd11 = qd1 * qd1
    t1_0 = dH00[0] * qd00 + (dH01[0] + dH00[1]) * qd01 + dH01[1] * qd11
    t1_1 = dH01[0] * qd00 + (dH11[0] + dH01[1]) * qd01 + dH11[1] * qd11
    t2_0 = dH00[0] * qd00 + 2.0 * dH01[0] * qd01 + dH11[0] * qd11
    t2_1 = dH00[1] * qd00 + 2.0 * dH01[1] * qd01 + dH11[1] * qd11
    c0 = t1_0 - 0.5 * t2_0
    c1 = t1_1 - 0.5 * t2_1

    # ---- Euler-Lagrange: closed-form 2x2 SPD solve  H q_ddot = tau - c - g ----
    rhs0 = tau0 - c0 - g0
    rhs1 = tau1 - c1 - g1
    det = H00 * H11 - H01 * H01
    inv_det = pl.reciprocal(det)          # exact; H is SPD thanks to DIAG_SHIFT
    qdd0 = (H11 * rhs0 - H01 * rhs1) * inv_det
    qdd1 = (H00 * rhs1 - H01 * rhs0) * inv_det

    # ---- dx/dt = (q_dot | q_ddot | 0), one lane-dense store ----
    zero = jnp.zeros_like(qd0)
    out_ref[...] = jnp.concatenate([qd0, qd1, qdd0, qdd1, zero, zero], axis=0)


def init_params(key):
    keys = jax.random.split(key, 5)

    def lin(k, fan_in, fan_out):
        w = (jax.random.normal(k, (fan_in, fan_out), jnp.float32)
             / jnp.sqrt(jnp.float32(fan_in)))
        b = jnp.zeros((1, fan_out), jnp.float32)
        return w, b

    w0, b0 = lin(keys[0], H_PARAMS, N_NEURONS)
    w1, b1 = lin(keys[1], N_NEURONS, N_NEURONS)
    wd, bd = lin(keys[2], N_NEURONS, D_F)
    wo, bo = lin(keys[3], N_NEURONS, N_OFF)
    wv, bv = lin(keys[4], N_NEURONS, 1)
    return (w0, b0, w1, b1, wd, bd, wo, bo, wv, bv)


@jax.jit
def lode_rt_forward(t, x, params):
    """x: [B, 3*D_F] with columns (q | q_dot | tau). Returns dx/dt [B, 3*D_F]."""
    del t  # unused, as in the reference forward(t, x)
    (w0, b0, w1, b1, wd, bd, wo, bo, wv, bv) = params
    B = x.shape[0]

    # Feature-major (batch-on-lanes) packing; fuse the three heads into one.
    x_t = x.T                                            # [3*D_F, B]
    w0t, b0t = w0.T, b0.T                                # [32,3], [32,1]
    w1t, b1t = w1.T, b1.T                                # [32,32], [32,1]
    wht = jnp.concatenate([wd, wo, wv], axis=1).T        # [4, 32]
    bht = jnp.concatenate([bd, bo, bv], axis=1).T        # [4, 1]

    if B <= BT_MAX:
        bt, b_pad = B, B
    else:
        bt = BT_MAX
        b_pad = pl.cdiv(B, bt) * bt
        x_t = jnp.pad(x_t, ((0, 0), (0, b_pad - B)))

    out_t = pl.pallas_call(
        lode_rt_kernel,
        out_shape=jax.ShapeDtypeStruct((3 * D_F, b_pad), jnp.float32),
        grid=(b_pad // bt,),
        in_specs=[
            pl.BlockSpec((3 * D_F, bt), lambda i: (0, i)),
            pl.BlockSpec((N_NEURONS, H_PARAMS), lambda i: (0, 0)),
            pl.BlockSpec((N_NEURONS, 1), lambda i: (0, 0)),
            pl.BlockSpec((N_NEURONS, N_NEURONS), lambda i: (0, 0)),
            pl.BlockSpec((N_NEURONS, 1), lambda i: (0, 0)),
            pl.BlockSpec((HEAD_OUT, N_NEURONS), lambda i: (0, 0)),
            pl.BlockSpec((HEAD_OUT, 1), lambda i: (0, 0)),
        ],
        out_specs=pl.BlockSpec((3 * D_F, bt), lambda i: (0, i)),
        compiler_params=pltpu.CompilerParams(
            dimension_semantics=("parallel",),
            vmem_limit_bytes=32 * 1024 * 1024,
        ),
    )(x_t, w0t, b0t, w1t, b1t, wht, bht)

    return out_t[:, :B].T


if __name__ == "__main__":
    key = jax.random.PRNGKey(0)
    k_param, k_x = jax.random.split(key)
    params = init_params(k_param)

    # Small deterministic test (single-tile path).
    B = 8
    x = jax.random.normal(k_x, (B, 3 * D_F), jnp.float32)   # (q | q_dot | tau)
    out = lode_rt_forward(jnp.float32(0.0), x, params)
    jax.block_until_ready(out)
    assert out.shape == (B, 3 * D_F)
    assert bool(jnp.all(jnp.isfinite(out)))
    # dq/dt must equal q_dot and du/dt must be zero (pure pass-through).
    assert bool(jnp.allclose(out[:, :D_F], x[:, D_F:2 * D_F]))
    assert bool(jnp.all(out[:, 2 * D_F:] == 0.0))

    # Exercise the gridded (multi-tile + padded) path as well.
    B2 = 1300
    x2 = jax.random.normal(jax.random.PRNGKey(1), (B2, 3 * D_F), jnp.float32)
    out2 = lode_rt_forward(jnp.float32(0.0), x2, params)
    jax.block_until_ready(out2)
    assert out2.shape == (B2, 3 * D_F)
    assert bool(jnp.all(jnp.isfinite(out2)))

    print("KERNEL_OK")
</pallas_src>

<mosaic_0001>
module attributes {stable_mosaic.version = 11 : i64} {
  func.func @lode_rt_kernel(%arg0: i32, %arg1: memref<6x8xf32, #tpu.memory_space<vmem>>, %arg2: memref<32x3xf32, #tpu.memory_space<vmem>>, %arg3: memref<32x1xf32, #tpu.memory_space<vmem>>, %arg4: memref<32x32xf32, #tpu.memory_space<vmem>>, %arg5: memref<32x1xf32, #tpu.memory_space<vmem>>, %arg6: memref<4x32xf32, #tpu.memory_space<vmem>>, %arg7: memref<4x1xf32, #tpu.memory_space<vmem>>, %arg8: memref<6x8xf32, #tpu.memory_space<vmem>>) attributes {dimension_semantics = [#tpu.dimension_semantics<parallel>], iteration_bounds = array<i64: 1>, scalar_prefetch = 0 : i64, scratch_operands = 0 : i64, tpu.core_type = #tpu.core_type<tc>, window_params = [{transform_indices = @transform_0, window_bounds = array<i64: 6, 8>}, {pipeline_mode = #tpu.pipeline_mode<synchronous>, transform_indices = @transform_1, window_bounds = array<i64: 32, 3>}, {pipeline_mode = #tpu.pipeline_mode<synchronous>, transform_indices = @transform_2, window_bounds = array<i64: 32, 1>}, {pipeline_mode = #tpu.pipeline_mode<synchronous>, transform_indices = @transform_3, window_bounds = array<i64: 32, 32>}, {pipeline_mode = #tpu.pipeline_mode<synchronous>, transform_indices = @transform_4, window_bounds = array<i64: 32, 1>}, {pipeline_mode = #tpu.pipeline_mode<synchronous>, transform_indices = @transform_5, window_bounds = array<i64: 4, 32>}, {pipeline_mode = #tpu.pipeline_mode<synchronous>, transform_indices = @transform_6, window_bounds = array<i64: 4, 1>}, {transform_indices = @transform_7, window_bounds = array<i64: 6, 8>}]} {
    %c0 = arith.constant 0 : index
    %c0_0 = arith.constant 0 : index
    %0 = vector.load %arg1[%c0, %c0_0] : memref<6x8xf32, #tpu.memory_space<vmem>>, vector<6x8xf32>
    %1 = vector.extract_strided_slice %0 {offsets = [0, 0], sizes = [1, 8], strides = [1, 1]} : vector<6x8xf32> to vector<1x8xf32>
    %2 = vector.extract_strided_slice %0 {offsets = [1, 0], sizes = [1, 8], strides = [1, 1]} : vector<6x8xf32> to vector<1x8xf32>
    %3 = vector.extract_strided_slice %0 {offsets = [2, 0], sizes = [1, 8], strides = [1, 1]} : vector<6x8xf32> to vector<1x8xf32>
    %4 = vector.extract_strided_slice %0 {offsets = [3, 0], sizes = [1, 8], strides = [1, 1]} : vector<6x8xf32> to vector<1x8xf32>
    %5 = vector.extract_strided_slice %0 {offsets = [4, 0], sizes = [1, 8], strides = [1, 1]} : vector<6x8xf32> to vector<1x8xf32>
    %6 = vector.extract_strided_slice %0 {offsets = [5, 0], sizes = [1, 8], strides = [1, 1]} : vector<6x8xf32> to vector<1x8xf32>
    %7 = math.cos %2 : vector<1x8xf32>
    %8 = math.sin %2 : vector<1x8xf32>
    %9 = tpu.concatenate %1, %7, %8 in 0 : vector<1x8xf32>, vector<1x8xf32>, vector<1x8xf32> -> vector<3x8xf32>
    %c0_1 = arith.constant 0 : index
    %c0_2 = arith.constant 0 : index
    %10 = vector.load %arg2[%c0_1, %c0_2] : memref<32x3xf32, #tpu.memory_space<vmem>>, vector<32x3xf32>
    %cst = arith.constant dense<0.000000e+00> : vector<32x8xf32>
    %11 = tpu.matmul %10, %9, %cst {dimension_numbers = #tpu.dot_dimension_numbers<[1], [0], [0], [1], [0, 0, 1, 1], [], []>} : vector<32x3xf32>, vector<3x8xf32>, vector<32x8xf32> -> vector<32x8xf32>
    %c0_3 = arith.constant 0 : index
    %c0_4 = arith.constant 0 : index
    %12 = vector.load %arg3[%c0_3, %c0_4] : memref<32x1xf32, #tpu.memory_space<vmem>>, vector<32x1xf32>
    %13 = vector.broadcast %12 : vector<32x1xf32> to vector<32x8xf32>
    %14 = arith.addf %11, %13 : vector<32x8xf32>
    %15 = math.tanh %14 : vector<32x8xf32>
    %16 = arith.mulf %15, %15 : vector<32x8xf32>
    %cst_5 = arith.constant 1.000000e+00 : f32
    %17 = vector.broadcast %cst_5 : f32 to vector<32x8xf32>
    %18 = arith.subf %17, %16 : vector<32x8xf32>
    %19 = vector.extract_strided_slice %10 {offsets = [0, 0], sizes = [32, 1], strides = [1, 1]} : vector<32x3xf32> to vector<32x1xf32>
    %20 = vector.broadcast %19 : vector<32x1xf32> to vector<32x8xf32>
    %21 = arith.mulf %18, %20 : vector<32x8xf32>
    %22 = vector.extract_strided_slice %10 {offsets = [0, 1], sizes = [32, 1], strides = [1, 1]} : vector<32x3xf32> to vector<32x1xf32>
    %cst_6 = arith.constant 0.000000e+00 : f32
    %23 = vector.broadcast %cst_6 : f32 to vector<1x8xf32>
    %24 = arith.subf %23, %8 : vector<1x8xf32>
    %25 = vector.broadcast %22 : vector<32x1xf32> to vector<32x8xf32>
    %26 = vector.broadcast %24 : vector<1x8xf32> to vector<32x8xf32>
    %27 = arith.mulf %25, %26 : vector<32x8xf32>
    %28 = vector.extract_strided_slice %10 {offsets = [0, 2], sizes = [32, 1], strides = [1, 1]} : vector<32x3xf32> to vector<32x1xf32>
    %29 = vector.broadcast %28 : vector<32x1xf32> to vector<32x8xf32>
    %30 = vector.broadcast %7 : vector<1x8xf32> to vector<32x8xf32>
    %31 = arith.mulf %29, %30 : vector<32x8xf32>
    %32 = arith.addf %27, %31 : vector<32x8xf32>
    %33 = arith.mulf %18, %32 : vector<32x8xf32>
    %34 = tpu.concatenate %15, %21, %33 in 1 : vector<32x8xf32>, vector<32x8xf32>, vector<32x8xf32> -> vector<32x24xf32>
    %c0_7 = arith.constant 0 : index
    %c0_8 = arith.constant 0 : index
    %35 = vector.load %arg4[%c0_7, %c0_8] : memref<32x32xf32, #tpu.memory_space<vmem>>, vector<32x32xf32>
    %cst_9 = arith.constant dense<0.000000e+00> : vector<32x24xf32>
    %36 = tpu.matmul %35, %34, %cst_9 {dimension_numbers = #tpu.dot_dimension_numbers<[1], [0], [0], [1], [0, 0, 1, 1], [], []>} : vector<32x32xf32>, vector<32x24xf32>, vector<32x24xf32> -> vector<32x24xf32>
    %37 = vector.extract_strided_slice %36 {offsets = [0, 0], sizes = [32, 8], strides = [1, 1]} : vector<32x24xf32> to vector<32x8xf32>
    %c0_10 = arith.constant 0 : index
    %c0_11 = arith.constant 0 : index
    %38 = vector.load %arg5[%c0_10, %c0_11] : memref<32x1xf32, #tpu.memory_space<vmem>>, vector<32x1xf32>
    %39 = vector.broadcast %38 : vector<32x1xf32> to vector<32x8xf32>
    %40 = arith.addf %37, %39 : vector<32x8xf32>
    %41 = math.tanh %40 : vector<32x8xf32>
    %42 = arith.mulf %41, %41 : vector<32x8xf32>
    %cst_12 = arith.constant 1.000000e+00 : f32
    %43 = vector.broadcast %cst_12 : f32 to vector<32x8xf32>
    %44 = arith.subf %43, %42 : vector<32x8xf32>
    %45 = vector.extract_strided_slice %36 {offsets = [0, 8], sizes = [32, 8], strides = [1, 1]} : vector<32x24xf32> to vector<32x8xf32>
    %46 = arith.mulf %44, %45 : vector<32x8xf32>
    %47 = vector.extract_strided_slice %36 {offsets = [0, 16], sizes = [32, 8], strides = [1, 1]} : vector<32x24xf32> to vector<32x8xf32>
    %48 = arith.mulf %44, %47 : vector<32x8xf32>
    %49 = tpu.concatenate %41, %46, %48 in 1 : vector<32x8xf32>, vector<32x8xf32>, vector<32x8xf32> -> vector<32x24xf32>
    %c0_13 = arith.constant 0 : index
    %c0_14 = arith.constant 0 : index
    %50 = vector.load %arg6[%c0_13, %c0_14] : memref<4x32xf32, #tpu.memory_space<vmem>>, vector<4x32xf32>
    %cst_15 = arith.constant dense<0.000000e+00> : vector<4x24xf32>
    %51 = tpu.matmul %50, %49, %cst_15 {dimension_numbers = #tpu.dot_dimension_numbers<[1], [0], [0], [1], [0, 0, 1, 1], [], []>} : vector<4x32xf32>, vector<32x24xf32>, vector<4x24xf32> -> vector<4x24xf32>
    %52 = vector.extract_strided_slice %51 {offsets = [0, 0], sizes = [4, 8], strides = [1, 1]} : vector<4x24xf32> to vector<4x8xf32>
    %c0_16 = arith.constant 0 : index
    %c0_17 = arith.constant 0 : index
    %53 = vector.load %arg7[%c0_16, %c0_17] : memref<4x1xf32, #tpu.memory_space<vmem>>, vector<4x1xf32>
    %54 = vector.broadcast %53 : vector<4x1xf32> to vector<4x8xf32>
    %55 = arith.addf %52, %54 : vector<4x8xf32>
    %56 = vector.extract_strided_slice %51 {offsets = [0, 8], sizes = [4, 8], strides = [1, 1]} : vector<4x24xf32> to vector<4x8xf32>
    %57 = vector.extract_strided_slice %51 {offsets = [0, 16], sizes = [4, 8], strides = [1, 1]} : vector<4x24xf32> to vector<4x8xf32>
    %58 = vector.extract_strided_slice %55 {offsets = [0, 0], sizes = [2, 8], strides = [1, 1]} : vector<4x8xf32> to vector<2x8xf32>
    %cst_18 = arith.constant 0.000000e+00 : f32
    %59 = vector.broadcast %cst_18 : f32 to vector<2x8xf32>
    %60 = arith.subf %59, %58 : vector<2x8xf32>
    %61 = math.exp %60 : vector<2x8xf32>
    %cst_19 = arith.constant 1.000000e+00 : f32
    %62 = vector.broadcast %cst_19 : f32 to vector<2x8xf32>
    %63 = arith.addf %62, %61 : vector<2x8xf32>
    %cst_20 = arith.constant 1.000000e+00 : f32
    %64 = vector.broadcast %cst_20 : f32 to vector<2x8xf32>
    %65 = arith.divf %64, %63 : vector<2x8xf32>
    %cst_21 = arith.constant 0.000000e+00 : f32
    %66 = vector.broadcast %cst_21 : f32 to vector<2x8xf32>
    %67 = arith.maximumf %58, %66 : vector<2x8xf32>
    %68 = math.absf %58 : vector<2x8xf32>
    %cst_22 = arith.constant 0.000000e+00 : f32
    %69 = vector.broadcast %cst_22 : f32 to vector<2x8xf32>
    %70 = arith.subf %69, %68 : vector<2x8xf32>
    %71 = math.exp %70 : vector<2x8xf32>
    %cst_23 = arith.constant 1.000000e+00 : f32
    %72 = vector.broadcast %cst_23 : f32 to vector<2x8xf32>
    %73 = arith.addf %72, %71 : vector<2x8xf32>
    %74 = math.log %73 : vector<2x8xf32>
    %75 = arith.addf %67, %74 : vector<2x8xf32>
    %cst_24 = arith.constant 1.000000e-01 : f32
    %76 = vector.broadcast %cst_24 : f32 to vector<2x8xf32>
    %77 = arith.addf %75, %76 : vector<2x8xf32>
    %78 = vector.extract_strided_slice %77 {offsets = [0, 0], sizes = [1, 8], strides = [1, 1]} : vector<2x8xf32> to vector<1x8xf32>
    %79 = vector.extract_strided_slice %77 {offsets = [1, 0], sizes = [1, 8], strides = [1, 1]} : vector<2x8xf32> to vector<1x8xf32>
    %80 = vector.extract_strided_slice %55 {offsets = [2, 0], sizes = [1, 8], strides = [1, 1]} : vector<4x8xf32> to vector<1x8xf32>
    %81 = vector.extract_strided_slice %65 {offsets = [0, 0], sizes = [1, 8], strides = [1, 1]} : vector<2x8xf32> to vector<1x8xf32>
    %82 = vector.extract_strided_slice %56 {offsets = [0, 0], sizes = [1, 8], strides = [1, 1]} : vector<4x8xf32> to vector<1x8xf32>
    %83 = arith.mulf %81, %82 : vector<1x8xf32>
    %84 = vector.extract_strided_slice %65 {offsets = [0, 0], sizes = [1, 8], strides = [1, 1]} : vector<2x8xf32> to vector<1x8xf32>
    %85 = vector.extract_strided_slice %57 {offsets = [0, 0], sizes = [1, 8], strides = [1, 1]} : vector<4x8xf32> to vector<1x8xf32>
    %86 = arith.mulf %84, %85 : vector<1x8xf32>
    %87 = vector.extract_strided_slice %65 {offsets = [1, 0], sizes = [1, 8], strides = [1, 1]} : vector<2x8xf32> to vector<1x8xf32>
    %88 = vector.extract_strided_slice %56 {offsets = [1, 0], sizes = [1, 8], strides = [1, 1]} : vector<4x8xf32> to vector<1x8xf32>
    %89 = arith.mulf %87, %88 : vector<1x8xf32>
    %90 = vector.extract_strided_slice %65 {offsets = [1, 0], sizes = [1, 8], strides = [1, 1]} : vector<2x8xf32> to vector<1x8xf32>
    %91 = vector.extract_strided_slice %57 {offsets = [1, 0], sizes = [1, 8], strides = [1, 1]} : vector<4x8xf32> to vector<1x8xf32>
    %92 = arith.mulf %90, %91 : vector<1x8xf32>
    %93 = vector.extract_strided_slice %56 {offsets = [2, 0], sizes = [1, 8], strides = [1, 1]} : vector<4x8xf32> to vector<1x8xf32>
    %94 = vector.extract_strided_slice %57 {offsets = [2, 0], sizes = [1, 8], strides = [1, 1]} : vector<4x8xf32> to vector<1x8xf32>
    %95 = vector.extract_strided_slice %56 {offsets = [3, 0], sizes = [1, 8], strides = [1, 1]} : vector<4x8xf32> to vector<1x8xf32>
    %96 = vector.extract_strided_slice %57 {offsets = [3, 0], sizes = [1, 8], strides = [1, 1]} : vector<4x8xf32> to vector<1x8xf32>
    %97 = arith.mulf %78, %78 : vector<1x8xf32>
    %98 = arith.mulf %80, %78 : vector<1x8xf32>
    %99 = arith.mulf %80, %80 : vector<1x8xf32>
    %100 = arith.mulf %79, %79 : vector<1x8xf32>
    %101 = arith.addf %99, %100 : vector<1x8xf32>
    %cst_25 = arith.constant 2.000000e+00 : f32
    %102 = vector.broadcast %cst_25 : f32 to vector<1x8xf32>
    %103 = arith.mulf %102, %78 : vector<1x8xf32>
    %104 = arith.mulf %103, %83 : vector<1x8xf32>
    %cst_26 = arith.constant 2.000000e+00 : f32
    %105 = vector.broadcast %cst_26 : f32 to vector<1x8xf32>
    %106 = arith.mulf %105, %78 : vector<1x8xf32>
    %107 = arith.mulf %106, %86 : vector<1x8xf32>
    %108 = arith.mulf %93, %78 : vector<1x8xf32>
    %109 = arith.mulf %80, %83 : vector<1x8xf32>
    %110 = arith.addf %108, %109 : vector<1x8xf32>
    %111 = arith.mulf %94, %78 : vector<1x8xf32>
    %112 = arith.mulf %80, %86 : vector<1x8xf32>
    %113 = arith.addf %111, %112 : vector<1x8xf32>
    %114 = arith.mulf %80, %93 : vector<1x8xf32>
    %115 = arith.mulf %79, %89 : vector<1x8xf32>
    %116 = arith.addf %114, %115 : vector<1x8xf32>
    %cst_27 = arith.constant 2.000000e+00 : f32
    %117 = vector.broadcast %cst_27 : f32 to vector<1x8xf32>
    %118 = arith.mulf %117, %116 : vector<1x8xf32>
    %119 = arith.mulf %80, %94 : vector<1x8xf32>
    %120 = arith.mulf %79, %92 : vector<1x8xf32>
    %121 = arith.addf %119, %120 : vector<1x8xf32>
    %cst_28 = arith.constant 2.000000e+00 : f32
    %122 = vector.broadcast %cst_28 : f32 to vector<1x8xf32>
    %123 = arith.mulf %122, %121 : vector<1x8xf32>
    %124 = arith.mulf %3, %3 : vector<1x8xf32>
    %125 = arith.mulf %3, %4 : vector<1x8xf32>
    %126 = arith.mulf %4, %4 : vector<1x8xf32>
    %127 = arith.mulf %104, %124 : vector<1x8xf32>
    %128 = arith.addf %110, %107 : vector<1x8xf32>
    %129 = arith.mulf %128, %125 : vector<1x8xf32>
    %130 = arith.addf %127, %129 : vector<1x8xf32>
    %131 = arith.mulf %113, %126 : vector<1x8xf32>
    %132 = arith.addf %130, %131 : vector<1x8xf32>
    %133 = arith.mulf %110, %124 : vector<1x8xf32>
    %134 = arith.addf %118, %113 : vector<1x8xf32>
    %135 = arith.mulf %134, %125 : vector<1x8xf32>
    %136 = arith.addf %133, %135 : vector<1x8xf32>
    %137 = arith.mulf %123, %126 : vector<1x8xf32>
    %138 = arith.addf %136, %137 : vector<1x8xf32>
    %139 = arith.mulf %104, %124 : vector<1x8xf32>
    %cst_29 = arith.constant 2.000000e+00 : f32
    %140 = vector.broadcast %cst_29 : f32 to vector<1x8xf32>
    %141 = arith.mulf %140, %110 : vector<1x8xf32>
    %142 = arith.mulf %141, %125 : vector<1x8xf32>
    %143 = arith.addf %139, %142 : vector<1x8xf32>
    %144 = arith.mulf %118, %126 : vector<1x8xf32>
    %145 = arith.addf %143, %144 : vector<1x8xf32>
    %146 = arith.mulf %107, %124 : vector<1x8xf32>
    %cst_30 = arith.constant 2.000000e+00 : f32
    %147 = vector.broadcast %cst_30 : f32 to vector<1x8xf32>
    %148 = arith.mulf %147, %113 : vector<1x8xf32>
    %149 = arith.mulf %148, %125 : vector<1x8xf32>
    %150 = arith.addf %146, %149 : vector<1x8xf32>
    %151 = arith.mulf %123, %126 : vector<1x8xf32>
    %152 = arith.addf %150, %151 : vector<1x8xf32>
    %cst_31 = arith.constant 5.000000e-01 : f32
    %153 = vector.broadcast %cst_31 : f32 to vector<1x8xf32>
    %154 = arith.mulf %153, %145 : vector<1x8xf32>
    %155 = arith.subf %132, %154 : vector<1x8xf32>
    %cst_32 = arith.constant 5.000000e-01 : f32
    %156 = vector.broadcast %cst_32 : f32 to vector<1x8xf32>
    %157 = arith.mulf %156, %152 : vector<1x8xf32>
    %158 = arith.subf %138, %157 : vector<1x8xf32>
    %159 = arith.subf %5, %155 : vector<1x8xf32>
    %160 = arith.subf %159, %95 : vector<1x8xf32>
    %161 = arith.subf %6, %158 : vector<1x8xf32>
    %162 = arith.subf %161, %96 : vector<1x8xf32>
    %163 = arith.mulf %97, %101 : vector<1x8xf32>
    %164 = arith.mulf %98, %98 : vector<1x8xf32>
    %165 = arith.subf %163, %164 : vector<1x8xf32>
    %166 = tpu.reciprocal %165 : vector<1x8xf32> -> vector<1x8xf32>
    %167 = arith.mulf %101, %160 : vector<1x8xf32>
    %168 = arith.mulf %98, %162 : vector<1x8xf32>
    %169 = arith.subf %167, %168 : vector<1x8xf32>
    %170 = arith.mulf %169, %166 : vector<1x8xf32>
    %171 = arith.mulf %97, %162 : vector<1x8xf32>
    %172 = arith.mulf %98, %160 : vector<1x8xf32>
    %173 = arith.subf %171, %172 : vector<1x8xf32>
    %174 = arith.mulf %173, %166 : vector<1x8xf32>
    %cst_33 = arith.constant 0.000000e+00 : f32
    %175 = vector.broadcast %cst_33 : f32 to vector<1x8xf32>
    %176 = tpu.concatenate %3, %4, %170, %174, %175, %175 in 0 : vector<1x8xf32>, vector<1x8xf32>, vector<1x8xf32>, vector<1x8xf32>, vector<1x8xf32>, vector<1x8xf32> -> vector<6x8xf32>
    %c0_34 = arith.constant 0 : index
    %c0_35 = arith.constant 0 : index
    %177 = vector.load %arg8[%c0_34, %c0_35] : memref<6x8xf32, #tpu.memory_space<vmem>>, vector<6x8xf32>
    tpu.vector_store %arg8[%c0_34, %c0_35], %176 {strides = array<i32>} : memref<6x8xf32, #tpu.memory_space<vmem>>, vector<6x8xf32>,
    return
  }
  func.func @transform_0(%arg0: i32) -> (i32, i32) {
    %c0_i32 = arith.constant 0 : i32
    %c0_i32_0 = arith.constant 0 : i32
    return %c0_i32, %arg0 : i32, i32
  }
  func.func @transform_1(%arg0: i32) -> (i32, i32) {
    %c0_i32 = arith.constant 0 : i32
    %c0_i32_0 = arith.constant 0 : i32
    %c0_i32_1 = arith.constant 0 : i32
    return %c0_i32, %c0_i32_0 : i32, i32
  }
  func.func @transform_2(%arg0: i32) -> (i32, i32) {
    %c0_i32 = arith.constant 0 : i32
    %c0_i32_0 = arith.constant 0 : i32
    %c0_i32_1 = arith.constant 0 : i32
    return %c0_i32, %c0_i32_0 : i32, i32
  }
  func.func @transform_3(%arg0: i32) -> (i32, i32) {
    %c0_i32 = arith.constant 0 : i32
    %c0_i32_0 = arith.constant 0 : i32
    %c0_i32_1 = arith.constant 0 : i32
    return %c0_i32, %c0_i32_0 : i32, i32
  }
  func.func @transform_4(%arg0: i32) -> (i32, i32) {
    %c0_i32 = arith.constant 0 : i32
    %c0_i32_0 = arith.constant 0 : i32
    %c0_i32_1 = arith.constant 0 : i32
    return %c0_i32, %c0_i32_0 : i32, i32
  }
  func.func @transform_5(%arg0: i32) -> (i32, i32) {
    %c0_i32 = arith.constant 0 : i32
    %c0_i32_0 = arith.constant 0 : i32
    %c0_i32_1 = arith.constant 0 : i32
    return %c0_i32, %c0_i32_0 : i32, i32
  }
  func.func @transform_6(%arg0: i32) -> (i32, i32) {
    %c0_i32 = arith.constant 0 : i32
    %c0_i32_0 = arith.constant 0 : i32
    %c0_i32_1 = arith.constant 0 : i32
    return %c0_i32, %c0_i32_0 : i32, i32
  }
  func.func @transform_7(%arg0: i32) -> (i32, i32) {
    %c0_i32 = arith.constant 0 : i32
    %c0_i32_0 = arith.constant 0 : i32
    return %c0_i32, %arg0 : i32, i32
  }
}

</mosaic_0001>

<bundles_post_ra>
// kernel: lode_rt_forward.1
= control target key start
LH: loop header
LB: loop body
LE: loop exit
PB: predicated region body
PF: predicated region fallthrough
CT: control target
= control target key end

     0   :  { %vm269_vm0 = vcmask 23552   ;;  %v1229_v8 = vmov 0   ;;  %v1230_v18 = vmov 683565275   ;;  %v1231_v20 = vmov 2475754826   ;;  %s1525_s0 = inlined_call_operand.vmem [shape: f32[6,8], index: 0, kind: input, shape index: {}]   ;;  %s1526_s1 = inlined_call_operand.vmem [shape: f32[32,3], index: 1, kind: input, shape index: {}]   ;;  %s1527_s2 = inlined_call_operand.vmem [shape: f32[32,1], index: 2, kind: input, shape index: {}]   ;;  %s1528_s3 = inlined_call_operand.vmem [shape: f32[32,32], index: 3, kind: input, shape index: {}]   ;;  %s1529_s4 = inlined_call_operand.vmem [shape: f32[32,1], index: 4, kind: input, shape index: {}]   ;;  %s1530_s6 = inlined_call_operand.vmem [shape: f32[4,1], index: 6, kind: input, shape index: {}]   ;;  %s1531_s5 = inlined_call_operand.vmem [shape: f32[4,32], index: 5, kind: input, shape index: {}]   ;;  %s1532_s7 = inlined_call_operand.vmem [shape: f32[6,8], index: 7, kind: output, shape index: {}]  }
   0x1   :  { %v1288_v0 = vld [vmem:[%s1525_s0] sm:$0x3f]  ;;  %v247_v6 = vld [vmem:[%s1527_s2 + $0x10] sm:$0xff]  ;;  %1147 = vset.pattern.permute.xlu0 %v1229_v8  ;;  %1148 = vset.pattern.permute.xlu1 %v1229_v8  ;;  %v246_v10 = vld [vmem:[%s1527_s2 + $0x8] sm:$0xff]  ;;  %v1232_v22 = vmov 2131351028  }
   0x2   :  { %v30_v1 = vand.u32 2139095040, %v1288_v0  ;;  %v1294_v2 = vld [vmem:[%s1526_s1] sm:$0xff]  ;;  %v27_v4 = vand.u32 2147483647, %v1288_v0  ;;  %261 = vperm.xlu1 %1148, %v247_v6   ;;  %v248_v12 = vld [vmem:[%s1527_s2 + $0x18] sm:$0xff]  ;;  %v1235_v28 = vmov 1  }
   0x3   :  { %v245_v5 = vld [vmem:[%s1527_s2] sm:$0xff]  ;;  %1082 = vmatprep.mubr.msk.f32.mxu0 %vm269_vm0, %v1294_v2  ;;  %v1233_v24 = vmov 2102212464   ;;  %v1234_v26 = vmov 920167782   ;;  %v1319_v37 = vld [vmem:[%s1526_s1 + $0x8] sm:$0xff] }
   0x4   :  { %v31_v3 = vshrl.u32 %v30_v1, 23  ;;  %251 = vperm.xlu0 %1147, %v245_v5   ;;  %v34_v11 = vand.u32 8388607, %v27_v4  ;;  %v1236_v34 = vmov 1326507024   ;;  %v1325_v43 = vld [vmem:[%s1526_s1 + $0x10] sm:$0xff] }
   0x5   :  { %v1237_v53 = vmov 2   ;;  %v1348_v63 = vld [vmem:[%s1526_s1 + $0x18] sm:$0xff]  ;;  %vm29_vm8 = vcmp.lt.s32.totalorder %v1288_v0, 0  ;;  %vm28_vm9 = vcmp.le.f32.partialorder %v27_v4, 0.7853982  ;;  %s1238_s1 = smov 16  }
   0x6   :  { %v1044_v7 = vadd.s32 4294967169, %v31_v3  ;;  %266 = vperm.xlu1 %1148, %v248_v12   ;;  %v35_v15 = vor.u32 8388608, %v34_v11  ;;  %s1239_s18 = smov 8   ;;  %s1240_s11 = smov 120  }
   0x7   :  { %s1241_s12 = smov 112  }
   0x8   :  { %v37_v9 = vadd.s32 1, %v1044_v7  ;;  %256 = vperm.xlu0 %1147, %v246_v10   ;;  %v75_v36 = vshll.u32 %v35_v15, 8 }
   0xa   :  { %vm38_vm1 = vcmp.gt.s32.totalorder %v37_v9, 0  ;;  %1150 = vset.pattern.permute.xlu1 %v1235_v28 }
   0xb   :  { %v39_v13 = vsel %vm38_vm1, %v37_v9, 0  ;;  %409 = vperm.xlu1 %1150, %v1319_v37   ;;  %vm119_vm1 = vweird.f32 %v1288_v0 }
   0xc   :  { %v41_v14 = vand.u32 31, %v39_v13  ;;  %v40_v16 = vshrl.u32 %v39_v13, 5  ;;  %1149 = vset.pattern.permute.xlu0 %v1235_v28 }
   0xd   :  { %405 = vperm.xlu0 %1149, %v1294_v2  }
   0xe   :  { %v42_v17 = vsub.s32 32, %v41_v14  ;;  %v44_v19 = vshll.u32 %v1230_v18, %v41_v14  ;;  %v47_v21 = vshll.u32 %v1231_v20, %v41_v14  ;;  %v50_v23 = vshll.u32 %v1232_v22, %v41_v14 }
   0xf   :  { %v53_v25 = vshll.u32 %v1233_v24, %v41_v14  ;;  %v56_v27 = vshll.u32 %v1234_v26, %v41_v14  ;;  %vm59_vm2 = vcmp.lt.s32.totalorder %v40_v16, 1  ;;  %vm62_vm3 = vcmp.lt.s32.totalorder %v40_v16, 4  ;;  %1151 = vset.pattern.permute.xlu1 %v1237_v53 }
  0x10   :  { %v43_v29 = vshrl.u32 %v1230_v18, %v42_v17  ;;  %v45_v30 = vshrl.u32 %v1231_v20, %v42_v17  ;;  %v48_v31 = vshrl.u32 %v1232_v22, %v42_v17  ;;  %v51_v32 = vshrl.u32 %v1233_v24, %v42_v17  ;;  %429 = vperm.xlu1 %1151, %v1294_v2  }
  0x11   :  { %v54_v33 = vshrl.u32 %v1234_v26, %v42_v17  ;;  %v57_v35 = vshrl.u32 %v1236_v34, %v42_v17  ;;  %vm60_vm4 = vcmp.lt.s32.totalorder %v40_v16, 2  ;;  %vm61_vm5 = vcmp.lt.s32.totalorder %v40_v16, 3  ;;  %413 = vperm.xlu0 %1149, %v1325_v43  }
  0x12   :  { %v46_v38 = vor.u32 %v45_v30, %v44_v19  ;;  %v49_v39 = vor.u32 %v48_v31, %v47_v21  ;;  %v52_v40 = vor.u32 %v51_v32, %v50_v23 }
  0x13   :  { %v55_v41 = vor.u32 %v54_v33, %v53_v25  ;;  %v58_v42 = vor.u32 %v57_v35, %v56_v27 }
  0x14   :  { %v63_v44 = vsel %vm59_vm2, %v43_v29, %v46_v38  ;;  %v64_v45 = vsel %vm62_vm3, %v52_v40, 2102212464  ;;  %v67_v46 = vsel %vm59_vm2, %v46_v38, %v49_v39  ;;  %v71_v47 = vsel %vm59_vm2, %v49_v39, %v52_v40  ;;  %1152 = vset.pattern.permute.xlu1 %v1229_v8 }
  0x15   :  { %v65_v48 = vsel %vm61_vm5, %v49_v39, %v64_v45  ;;  %v68_v49 = vsel %vm62_vm3, %v55_v41, 920167782  ;;  %v72_v50 = vsel %vm62_vm3, %v58_v42, 1326507024  ;;  %1153 = vset.pattern.permute.xlu0 %v1237_v53  ;;  %384 = vperm.xlu1 %1152, %v1294_v2   ;;  %vm237_vm2 = vcmask 1040384  }
  0x16   :  { %v69_v51 = vsel %vm61_vm5, %v52_v40, %v68_v49  ;;  %v73_v52 = vsel %vm61_vm5, %v55_v41, %v72_v50  ;;  %v66_v54 = vsel %vm60_vm4, %v63_v44, %v65_v48  ;;  %433 = vperm.xlu0 %1153, %v1319_v37   ;;  %vm239_vm3 = vcmask 1041408  }
  0x17   :  { %v70_v55 = vsel %vm60_vm4, %v67_v46, %v69_v51  ;;  %v74_v56 = vsel %vm60_vm4, %v71_v47, %v73_v52  ;;  %v82_v61 = vmul.u32 %v75_v36, %v66_v54  ;;  %vm282_vm4 = vcmask 1042432  }
  0x18   :  { %v1335_v57 = vmul.u32.u64.low %v75_v36, %v74_v56  ;;  %v1336_v58 = vmul.u32.u64.high %v75_v36, %v74_v56, %v1335_v57  ;;  %v1338_v59 = vmul.u32.u64.low %v75_v36, %v70_v55  ;;  %v1339_v60 = vmul.u32.u64.high %v75_v36, %v70_v55, %v1338_v59 }
  0x19   :  { %388 = vperm.xlu1 %1152, %v1319_v37   ;;  %v420_v51 = vlaneseq  ;;  %vm492_vm5 = vcmask 64512  }
  0x1a   :  { %vm84_vm6 = vc.u32 %v1336_v58, %v1338_v59  ;;  %v85_v62 = vadd.s32 1, %v1339_v60  ;;  %441 = vperm.xlu0 %1153, %v1348_v63   ;;  %v83_v13 = vadd.s32 %v1338_v59, %v1336_v58 }
  0x1b   :  { %v421_v54 = vshrl.u32 %v420_v51, 7  ;;  %v502_v51 = vld [vmem:[%s1528_s3] sm:$0xff] }
  0x1c   :  { %v86_v1 = vsel %vm84_vm6, %v85_v62, %v1339_v60  ;;  %vm497_vm6 = vcmask 130048  }
  0x1d   :  { %v87_v3 = vadd.s32 %v86_v1, %v82_v61  ;;  %1154 = vset.pattern.permute.xlu1 %v1235_v28  ;;  %v422_v57 = vsub.s32 1, %v421_v54  ;;  %v605_v54 = vld [vmem:[%s1529_s4 + $0x8] sm:$0xff] }
  0x1e   :  { %1177 = vset.pattern.permute.xlu0 %v1229_v8  ;;  %417 = vperm.xlu1 %1154, %v1348_v63  }
  0x1f   :  { %v88_v5 = vadd.s32 536870912, %v87_v3 }
  0x21   :  { %v89_v6 = vshrl.u32 %v88_v5, 30 }
  0x22   :  { %1155 = vset.pattern.permute.xlu1 %v1237_v53 }
  0x23   :  { %v90_v7 = vshll.u32 %v89_v6, 30  ;;  %437 = vperm.xlu1 %1155, %v1325_v43  }
  0x25   :  { %v91_v9 = vsub.s32 %v87_v3, %v90_v7 }
  0x27   :  { %v93_v10 = vsub.s32 0, %v91_v9  ;;  %1156 = vset.pattern.permute.xlu1 %v1229_v8  ;;  %v113_v8 = vsub.s32 4, %v89_v6 }
  0x28   :  { %392 = vperm.xlu1 %1156, %v1325_v43  }
  0x29   :  { %v1045_v2 = vmin.u32 %v93_v10, %v91_v9  ;;  %v114_v27 = vsel %vm29_vm8, %v113_v8, %v89_v6 }
  0x2a   :  { %v116_v30 = vsel %vm28_vm9, 0, %v114_v27 }
  0x2b   :  { %v95_v11 = vclz %v1045_v2  ;;  %v223_v31 = vadd.s32 3, %v116_v30  ;;  %v120_v32 = vand.u32 3, %v116_v30 }
  0x2c   :  { %396 = vperm.xlu1 %1156, %v1348_v63  }
  0x2d   :  { %v1046_v12 = vadd.s32 4294967294, %v95_v11  ;;  %v224_v33 = vand.u32 3, %v223_v31  ;;  %vm125_vm10 = vcmp.eq.s32.totalorder %v120_v32, 2  ;;  %vm122_vm12 = vcmp.eq.s32.totalorder %v120_v32, 0 }
  0x2e   :  { %vm121_vm14 = vcmp.lt.s32.totalorder %v120_v32, 2 }
  0x2f   :  { %vm1047_vm7 = vcmp.lt.s32.totalorder %v1046_v12, 0  ;;  %vm229_vm11 = vcmp.eq.s32.totalorder %v224_v33, 2  ;;  %vm226_vm13 = vcmp.eq.s32.totalorder %v224_v33, 0  ;;  %vm225_vm15 = vcmp.lt.s32.totalorder %v224_v33, 2 }
  0x30   :  { %v98_v14 = vsel %vm1047_vm7, 0, %v1046_v12  ;;  %vm1243_vm7 = vmmov 0  }
  0x31   :  { %v99_v15 = vsub.s32 32, %v98_v14  ;;  %v100_v16 = vshll.u32 %v91_v9, %v98_v14  ;;  %v103_v17 = vsub.s32 4294967266, %v98_v14 }
  0x33   :  { %v101_v18 = vshrl.u32 %v83_v13, %v99_v15  ;;  %v104_v19 = vadd.s32 127, %v103_v17 }
  0x35   :  { %v102_v20 = vor.u32 %v101_v18, %v100_v16  ;;  %v105_v21 = vshll.u32 %v104_v19, 23 }
  0x37   :  { %v106_v22 = vor.u32 4788187, %v105_v21  ;;  %v109_v23 = vcvt.s32.f32 %v102_v20 }
  0x39   :  { %v107_v24 = vand.u32 2147483647, %v106_v22 }
  0x3b   :  { %v110_v25 = vmul.f32 %v109_v23, %v107_v24 }
  0x3d   :  { %v111_v26 = vxor.u32 2147483648, %v110_v25 }
  0x3f   :  { %v112_v28 = vsel %vm29_vm8, %v111_v26, %v110_v25  ;;  %vm1034_vm8 = vcmask 1043456  }
  0x40   :  { %v115_v29 = vsel %vm28_vm9, %v1288_v0, %v112_v28  ;;  %vm1036_vm9 = vcmask 1044480  }
  0x41   :  { %1198 = vcosq.f32 %v115_v29 }
  0x42   :  { %1200 = vsinq.f32 %v115_v29 }
  0x4b   :  { %v1199_v34 = vpop.eup %1198 }
  0x4c   :  { %v1201_v35 = vpop.eup %1200  ;;  %v126_v36 = vxor.u32 2147483648, %v1199_v34 }
  0x4d   :  { %v123_v4 = vxor.u32 2147483648, %v1201_v35 }
  0x4e   :  { %v127_v38 = vsel %vm125_vm10, %v126_v36, %v1201_v35  ;;  %v231_v39 = vsel %vm229_vm11, %v126_v36, %v1201_v35  ;;  %vm1038_vm10 = vcmask 62464  }
  0x4f   :  { %v124_v40 = vsel %vm122_vm12, %v1199_v34, %v123_v4  ;;  %v228_v41 = vsel %vm226_vm13, %v1199_v34, %v123_v4 }
  0x50   :  { %v128_v42 = vsel %vm121_vm14, %v124_v40, %v127_v38  ;;  %v232_v44 = vsel %vm225_vm15, %v228_v41, %v231_v39 }
  0x51   :  { %v129_v45 = vsel %vm119_vm1, nan, %v128_v42  ;;  %v233_v46 = vsel %vm119_vm1, nan, %v232_v44 }
  0x52   :  { %v235_v47 = vrot.slane %v233_v46, 7  ;;  %v238_v48 = vsel %vm237_vm2, %v1288_v0, %v129_v45  ;;  %v403_v56 = vsub.f32 0.0, %v233_v46  ;;  %v447_v62 = vrot.slane %v129_v45, %v422_v57 }
  0x54   :  { %v240_v49 = vsel %vm239_vm3, %v238_v48, %v235_v47  ;;  %v423_v60 = vrot.slane %v403_v56, %v422_v57  ;;  %v604_v56 = vld [vmem:[%s1529_s4] sm:$0xff]  ;;  %v607_v57 = vld [vmem:[%s1529_s4 + $0x18] sm:$0xff] }
  0x55   :  { %1080 = vmatprep.subr.msk.mxu0 %vm282_vm4, %v240_v49 }
  0x56   :  { %1081 = vmatpush3.msk.msra.mxu0 %vm282_vm4, %v240_v49 }
  0x57   :  { %1083 = vmatmul.mubr.msk.f32.vlgmr.msra.gmra.mrb[0].mxu0 %vm269_vm0, %v1319_v37 }
  0x58   :  { %1085 = vmatprep.mubr.msk.f32.mxu0 %vm269_vm0, %v1325_v43 }
  0x5b   :  { %1086 = vmatmul.mubr.msk.f32.gmra.mrb[2].mxu0 %vm269_vm0, %v1348_v63  ;;  %vm506_vm0 = vcmask 261120  }
  0x5c   :  { %1096 = vmatprep.mubr.msk.f32.mxu1 %vm506_vm0, %v502_v51 }
  0x81   :  { %v262_v52 = vpop.permute.xlu1 %261 }
  0x83   :  { %v252_v50 = vpop.permute.xlu0 %251 }
  0x85   :  { %v267_v55 = vpop.permute.xlu1 %266 }
  0x87   :  { %v257_v53 = vpop.permute.xlu0 %256 }
  0x8a   :  { %v410_v59 = vpop.permute.xlu1 %409 }
  0x8b   :  { %v425_v3 = vmul.f32 %v423_v60, %v410_v59 }
  0x8c   :  { %v406_v58 = vpop.permute.xlu0 %405 }
  0x8d   :  { %v424_v37 = vmul.f32 %v423_v60, %v406_v58 }
  0x8f   :  { %v430_v1 = vpop.permute.xlu1 %429 }
  0x90   :  { %v414_v61 = vpop.permute.xlu0 %413  ;;  %v448_v43 = vmul.f32 %v447_v62, %v430_v1 }
  0x91   :  { %v426_v11 = vmul.f32 %v423_v60, %v414_v61 }
  0x92   :  { %v452_v63 = vadd.f32 %v448_v43, %v424_v37 }
  0x94   :  { %v385_v9 = vpop.permute.xlu1 %384 }
  0x95   :  { %v434_v5 = vpop.permute.xlu0 %433 }
  0x96   :  { %v449_v6 = vmul.f32 %v447_v62, %v434_v5 }
  0x98   :  { %v453_v7 = vadd.f32 %v449_v6, %v425_v3  ;;  %v389_v10 = vpop.permute.xlu1 %388 }
  0x99   :  { %v442_v15 = vpop.permute.xlu0 %441 }
  0x9a   :  { %v451_v17 = vmul.f32 %v447_v62, %v442_v15 }
  0x9d   :  { %v418_v2 = vpop.permute.xlu1 %417 }
  0x9e   :  { %v427_v13 = vmul.f32 %v423_v60, %v418_v2 }
  0xa0   :  { %v455_v18 = vadd.f32 %v451_v17, %v427_v13  ;;  %v503_v17 = vld [vmem:[%s1528_s3 + $0x8] sm:$0xff] }
  0xa2   :  { %v438_v12 = vpop.permute.xlu1 %437 }
  0xa3   :  { %v450_v14 = vmul.f32 %v447_v62, %v438_v12 }
  0xa5   :  { %v454_v16 = vadd.f32 %v450_v14, %v426_v11 }
  0xa7   :  { %v393_v29 = vpop.permute.xlu1 %392 }
  0xab   :  { %v397_v44 = vpop.permute.xlu1 %396 }
 0x12a   :  { %v1084_v19 = vpop.f32.mrb[0].mxu0 }
 0x12b   :  { %v358_v20 = vadd.f32 %v1084_v19, %v257_v53  ;;  %v352_v21 = vpop.f32.mrb[1].mxu0  ;;  %v505_v19 = vld [vmem:[%s1528_s3 + $0x18] sm:$0xff] }
 0x12c   :  { %v353_v22 = vadd.f32 %v352_v21, %v252_v50 }
 0x12d   :  { %1202 = vtanh.f32 %v358_v20 }
 0x12e   :  { %1204 = vtanh.f32 %v353_v22  ;;  %v1087_v23 = vpop.f32.mrb[2].mxu0 }
 0x12f   :  { %v368_v24 = vadd.f32 %v1087_v23, %v267_v55  ;;  %v362_v8 = vpop.f32.mrb[3].mxu0  ;;  %v606_v55 = vld [vmem:[%s1529_s4 + $0x10] sm:$0xff] }
 0x130   :  { %v363_v25 = vadd.f32 %v362_v8, %v262_v52 }
 0x131   :  { %1206 = vtanh.f32 %v368_v24 }
 0x132   :  { %1208 = vtanh.f32 %v363_v25 }
 0x137   :  { %v1203_v26 = vpop.eup %1202 }
 0x138   :  { %v1205_v27 = vpop.eup %1204  ;;  %v376_v28 = vmul.f32 %v1203_v26, %v1203_v26 }
 0x139   :  { %v375_v30 = vmul.f32 %v1205_v27, %v1205_v27 }
 0x13a   :  { %v380_v31 = vsub.f32 1.0, %v376_v28 }
 0x13b   :  { %v1207_v32 = vpop.eup %1206  ;;  %v379_v33 = vsub.f32 1.0, %v375_v30 }
 0x13c   :  { %v1209_v34 = vpop.eup %1208  ;;  %v378_v35 = vmul.f32 %v1207_v32, %v1207_v32  ;;  %v457_v36 = vmul.f32 %v453_v7, %v380_v31  ;;  %v400_v4 = vmul.f32 %v389_v10, %v380_v31 }
 0x13d   :  { %v377_v38 = vmul.f32 %v1209_v34, %v1209_v34  ;;  %v456_v39 = vmul.f32 %v452_v63, %v379_v33  ;;  %v399_v40 = vmul.f32 %v385_v9, %v379_v33 }
 0x13e   :  { %v382_v41 = vsub.f32 1.0, %v378_v35 }
 0x13f   :  { %v381_v42 = vsub.f32 1.0, %v377_v38  ;;  %v1162_v45 = vpack.i.bf16 %v457_v36, %v456_v39  ;;  %v1157_v46 = vpack.i.bf16 %v400_v4, %v399_v40 }
 0x140   :  { %v402_v47 = vmul.f32 %v397_v44, %v382_v41  ;;  %v459_v48 = vmul.f32 %v455_v18, %v382_v41  ;;  %v504_v18 = vld [vmem:[%s1528_s3 + $0x10] sm:$0xff] }
 0x141   :  { %v401_v49 = vmul.f32 %v393_v29, %v381_v42  ;;  %v458_v50 = vmul.f32 %v454_v16, %v381_v42  ;;  %1163 = vrot.lane.b32.xlu1 %v1162_v45, %s1238_s1  ;;  %1158 = vrot.lane.b32.xlu0 %v1157_v46, %s1239_s18  ;;  %v1242_v42 = vmov 0.0|0.0  }
 0x142   :  { %1121 = vmatprep.subr.bf16.mxu0 %v1242_v42 }
 0x143   :  { %v1167_v52 = vpack.i.bf16 %v402_v47, %v401_v49  ;;  %v1172_v53 = vpack.i.bf16 %v459_v48, %v458_v50 }
 0x145   :  { %1173 = vrot.lane.b32.xlu1 %v1172_v53, %s1238_s1  ;;  %1168 = vrot.lane.b32.xlu0 %v1167_v52, %s1239_s18 }
 0x149   :  { %615 = vperm.xlu1 %1156, %v605_v54   ;;  %610 = vperm.xlu0 %1177, %v604_v56  }
 0x14d   :  { %620 = vperm.xlu1 %1156, %v606_v55   ;;  %625 = vperm.xlu0 %1177, %v607_v57  }
 0x1b3   :  { %v1164_v58 = vpop.permute.xlu1 %1163  ;;  %v1159_v59 = vpop.permute.xlu0 %1158 }
 0x1b4   :  { %v1166_v60 = vunpack.i.h.bf16 %v1164_v58  ;;  %v1165_v61 = vunpack.i.l.bf16 %v1164_v58  ;;  %v1161_v62 = vunpack.i.h.bf16 %v1159_v59  ;;  %v1160_v37 = vunpack.i.l.bf16 %v1159_v59 }
 0x1b5   :  { %v1244_v59 = vmov 0.0  }
 0x1b6   :  { %v493_v1 = vsel %vm492_vm5, %v1205_v27, %v1160_v37  ;;  %v494_v3 = vsel %vm492_vm5, %v1203_v26, %v1161_v62  ;;  %1110 = vmatprep.mubr.msk.f32.mxu0 %vm1243_vm7, %v1244_v59 }
 0x1b7   :  { %v1174_v43 = vpop.permute.xlu1 %1173  ;;  %v1169_v5 = vpop.permute.xlu0 %1168  ;;  %v498_v6 = vsel %vm497_vm6, %v493_v1, %v1165_v61  ;;  %v499_v63 = vsel %vm497_vm6, %v494_v3, %v1166_v60  ;;  %v794_v3 = vld [vmem:[%s1530_s6] sm:$0xf] }
 0x1b8   :  { %v1176_v7 = vunpack.i.h.bf16 %v1174_v43  ;;  %v1175_v9 = vunpack.i.l.bf16 %v1174_v43  ;;  %v1171_v10 = vunpack.i.h.bf16 %v1169_v5  ;;  %v1170_v2 = vunpack.i.l.bf16 %v1169_v5 }
 0x1b9   :  { %v1113_v11 = vpack.c.bf16 %v499_v63, %v498_v6 }
 0x1ba   :  { %v496_v12 = vsel %vm492_vm5, %v1207_v32, %v1171_v10  ;;  %v495_v13 = vsel %vm492_vm5, %v1209_v34, %v1170_v2 }
 0x1bb   :  { %1114 = vmatprep.subr.bf16.mxu1 %v1113_v11  ;;  %v500_v14 = vsel %vm497_vm6, %v495_v13, %v1175_v9  ;;  %v501_v15 = vsel %vm497_vm6, %v496_v12, %v1176_v7 }
 0x1bc   :  { %1116 = vmatpush3.bf16.msra.mxu1 %v1113_v11  ;;  %v1117_v16 = vpack.c.bf16 %v501_v15, %v500_v14 }
 0x1be   :  { %1118 = vmatprep.subr.bf16.mxu1 %v1117_v16 }
 0x1c0   :  { %1120 = vmatpush3.bf16.msra.mxu1 %v1117_v16 }
 0x1c3   :  { %1097 = vmatmul.mubr.msk.f32.vlgmr.msra.gmra.mrb[0].mxu1 %vm506_vm0, %v503_v17 }
 0x1c4   :  { %1099 = vmatprep.mubr.msk.f32.mxu1 %vm506_vm0, %v504_v18 }
 0x1c7   :  { %1100 = vmatmul.mubr.msk.f32.gmra.mrb[2].mxu1 %vm506_vm0, %v505_v19 }
 0x1c8   :  { %v611_v24 = vpop.permute.xlu0 %610  ;;  %v616_v8 = vpop.permute.xlu1 %615 }
 0x1cc   :  { %v626_v27 = vpop.permute.xlu0 %625  ;;  %v621_v28 = vpop.permute.xlu1 %620 }
 0x296   :  { %v1098_v20 = vpop.f32.mrb[0].mxu1 }
 0x297   :  { %650 = vrot.lane.b32.xlu0 %v1098_v20, %s1240_s11  ;;  %v585_v21 = vpop.f32.mrb[1].mxu1  ;;  %v629_v25 = vadd.f32 %v1098_v20, %v616_v8 }
 0x298   :  { %648 = vrot.lane.b32.xlu1 %v585_v21, %s1240_s11  ;;  %v628_v26 = vadd.f32 %v611_v24, %v585_v21 }
 0x299   :  { %1210 = vtanh.f32 %v629_v25  ;;  %v720_v25 = vld [vmem:[%s1531_s5] sm:$0xf] }
 0x29a   :  { %v1101_v22 = vpop.f32.mrb[2].mxu1  ;;  %1212 = vtanh.f32 %v628_v26 }
 0x29b   :  { %666 = vrot.lane.b32.xlu0 %v1098_v20, %s1241_s12  ;;  %v595_v23 = vpop.f32.mrb[3].mxu1  ;;  %v631_v29 = vadd.f32 %v1101_v22, %v626_v27 }
 0x29c   :  { %664 = vrot.lane.b32.xlu1 %v585_v21, %s1241_s12  ;;  %v630_v30 = vadd.f32 %v621_v28, %v595_v23 }
 0x29d   :  { %1214 = vtanh.f32 %v631_v29 }
 0x29e   :  { %1216 = vtanh.f32 %v630_v30 }
 0x29f   :  { %654 = vrot.lane.b32.xlu0 %v1101_v22, %s1240_s11 }
 0x2a0   :  { %652 = vrot.lane.b32.xlu1 %v595_v23, %s1240_s11 }
 0x2a3   :  { %670 = vrot.lane.b32.xlu0 %v1101_v22, %s1241_s12  ;;  %v1211_v31 = vpop.eup %1210 }
 0x2a4   :  { %668 = vrot.lane.b32.xlu1 %v595_v23, %s1241_s12  ;;  %v1213_v32 = vpop.eup %1212  ;;  %v637_v33 = vmul.f32 %v1211_v31, %v1211_v31 }
 0x2a5   :  { %v636_v34 = vmul.f32 %v1213_v32, %v1213_v32 }
 0x2a6   :  { %v641_v35 = vsub.f32 1.0, %v637_v33 }
 0x2a7   :  { %v1215_v36 = vpop.eup %1214  ;;  %v640_v38 = vsub.f32 1.0, %v636_v34 }
 0x2a8   :  { %v1217_v39 = vpop.eup %1216  ;;  %v639_v45 = vmul.f32 %v1215_v36, %v1215_v36 }
 0x2a9   :  { %v638_v48 = vmul.f32 %v1217_v39, %v1217_v39 }
 0x2aa   :  { %v643_v52 = vsub.f32 1.0, %v639_v45 }
 0x2ab   :  { %v642_v55 = vsub.f32 1.0, %v638_v48 }
 0x309   :  { %v651_v4 = vpop.permute.xlu0 %650 }
 0x30a   :  { %v661_v40 = vmul.f32 %v651_v4, %v641_v35  ;;  %v649_v41 = vpop.permute.xlu1 %648 }
 0x30b   :  { %v660_v44 = vmul.f32 %v649_v41, %v640_v38 }
 0x30d   :  { %v1178_v46 = vpack.i.bf16 %v661_v40, %v660_v44  ;;  %v667_v47 = vpop.permute.xlu0 %666  ;;  %v881_v40 = vrot.slane %v1288_v0, 1 }
 0x30e   :  { %v677_v49 = vmul.f32 %v667_v47, %v641_v35  ;;  %v665_v50 = vpop.permute.xlu1 %664 }
 0x30f   :  { %v676_v51 = vmul.f32 %v665_v50, %v640_v38  ;;  %1179 = vrot.lane.b32.xlu1 %v1178_v46, %s1239_s18 }
 0x311   :  { %v1183_v53 = vpack.i.bf16 %v677_v49, %v676_v51  ;;  %v655_v54 = vpop.permute.xlu0 %654 }
 0x312   :  { %v663_v56 = vmul.f32 %v655_v54, %v643_v52  ;;  %v653_v57 = vpop.permute.xlu1 %652 }
 0x313   :  { %v662_v58 = vmul.f32 %v653_v57, %v642_v55  ;;  %1184 = vrot.lane.b32.xlu0 %v1183_v53, %s1238_s1 }
 0x315   :  { %v1188_v60 = vpack.i.bf16 %v663_v56, %v662_v58  ;;  %v671_v61 = vpop.permute.xlu0 %670 }
 0x316   :  { %v679_v62 = vmul.f32 %v671_v61, %v643_v52  ;;  %v669_v37 = vpop.permute.xlu1 %668 }
 0x317   :  { %v678_v1 = vmul.f32 %v669_v37, %v642_v55  ;;  %1189 = vrot.lane.b32.xlu1 %v1188_v60, %s1239_s18 }
 0x319   :  { %v1193_v43 = vpack.i.bf16 %v679_v62, %v678_v1 }
 0x31b   :  { %1194 = vrot.lane.b32.xlu0 %v1193_v43, %s1238_s1  ;;  %797 = vperm.xlu1 %1156, %v794_v3  }
 0x381   :  { %v1180_v5 = vpop.permute.xlu1 %1179 }
 0x382   :  { %v1182_v6 = vunpack.i.h.bf16 %v1180_v5  ;;  %v1181_v63 = vunpack.i.l.bf16 %v1180_v5 }
 0x384   :  { %v713_v2 = vsel %vm492_vm5, %v1211_v31, %v1182_v6  ;;  %v712_v11 = vsel %vm492_vm5, %v1213_v32, %v1181_v63 }
 0x385   :  { %v1185_v7 = vpop.permute.xlu0 %1184 }
 0x386   :  { %v1187_v9 = vunpack.i.h.bf16 %v1185_v7  ;;  %v1186_v10 = vunpack.i.l.bf16 %v1185_v7  ;;  %v1484_v7 = vmul.f32 %v1288_v0, %v1288_v0 }
 0x388   :  { %v716_v12 = vsel %vm497_vm6, %v712_v11, %v1186_v10  ;;  %v717_v13 = vsel %vm497_vm6, %v713_v2, %v1187_v9  ;;  %v905_v10 = vrot.slane %v1484_v7, 1 }
 0x389   :  { %v1122_v14 = vpack.c.bf16 %v717_v13, %v716_v12  ;;  %v1190_v15 = vpop.permute.xlu1 %1189 }
 0x38a   :  { %v1192_v16 = vunpack.i.h.bf16 %v1190_v15  ;;  %v1191_v17 = vunpack.i.l.bf16 %v1190_v15 }
 0x38b   :  { %1123 = vmatpush3.bf16.msra.mxu0 %v1122_v14 }
 0x38c   :  { %1124 = vmatprep.subr.bf16.mxu0 %v1242_v42  ;;  %v715_v21 = vsel %vm492_vm5, %v1215_v36, %v1192_v16  ;;  %v714_v22 = vsel %vm492_vm5, %v1217_v39, %v1191_v17  ;;  %v883_v42 = vmul.f32 %v881_v40, %v1288_v0 }
 0x38d   :  { %v1195_v18 = vpop.permute.xlu0 %1194 }
 0x38e   :  { %v1197_v19 = vunpack.i.h.bf16 %v1195_v18  ;;  %v1196_v20 = vunpack.i.l.bf16 %v1195_v18 }
 0x390   :  { %v718_v23 = vsel %vm497_vm6, %v714_v22, %v1196_v20  ;;  %v719_v24 = vsel %vm497_vm6, %v715_v21, %v1197_v19  ;;  %v885_v19 = vrot.slane %v1484_v7, 2 }
 0x391   :  { %v1125_v8 = vpack.c.bf16 %v719_v24, %v718_v23 }
 0x393   :  { %1126 = vmatpush3.bf16.msra.mxu0 %v1125_v8 }
 0x396   :  { %1111 = vmatmul.mubr.msk.f32.vlgmr.msra.gmra.mrb[4].mxu0 %vm506_vm0, %v720_v25 }
 0x39a   :  { %v798_v26 = vpop.permute.xlu1 %797 }
 0x469   :  { %v1443_v27 = vpop.f32.mrb[4].mxu0 }
 0x46a   :  { %v1446_v28 = vadd.f32 %v798_v26, %v1443_v27  ;;  %822 = vrot.lane.b32.xlu0 %v1443_v27, %s1241_s12  ;;  %v1112_v29 = vpop.f32.mrb[5].mxu0 }
 0x46c   :  { %v808_v30 = vand.u32 2147483647, %v1446_v28  ;;  %v807_v36 = vmax.f32 %v1446_v28, 0.0  ;;  %v801_v44 = vsub.f32 0.0, %v1446_v28 }
 0x46e   :  { %v809_v31 = vsub.f32 0.0, %v808_v30  ;;  %v802_v45 = vmul.f32 1.442695, %v801_v44 }
 0x470   :  { %v810_v32 = vmul.f32 1.442695, %v809_v31 }
 0x472   :  { %1218 = vpow2.f32 %v810_v32 }
 0x47c   :  { %v1219_v33 = vpop.eup %1218 }
 0x47d   :  { %v812_v34 = vadd.f32 1.0, %v1219_v33 }
 0x47f   :  { %1220 = vlog2.f32 %v812_v34 }
 0x480   :  { %1222 = vpow2.f32 %v802_v45 }
 0x489   :  { %v1221_v35 = vpop.eup %1220 }
 0x48a   :  { %v814_v4 = vmul.f32 0.6931472, %v1221_v35  ;;  %v1223_v46 = vpop.eup %1222 }
 0x48b   :  { %v804_v47 = vadd.f32 1.0, %v1223_v46 }
 0x48c   :  { %v815_v38 = vadd.f32 %v814_v4, %v807_v36 }
 0x48d   :  { %1224 = vrcp.f32 %v804_v47  ;;  %v979_v47 = vrot.slane %v1443_v27, 7 }
 0x48e   :  { %v1452_v39 = vadd.f32 0.1, %v815_v38 }
 0x490   :  { %v1456_v41 = vrot.slane %v1452_v39, 6  ;;  %v1470_v59 = vmul.f32 2.0, %v1452_v39 }
 0x492   :  { %852 = vrot.lane.b32.xlu1 %v1456_v41, %s1238_s1 }
 0x496   :  { %953 = vrot.lane.b32.xlu1 %v883_v42, %s1238_s1 }
 0x497   :  { %v1225_v48 = vpop.eup %1224 }
 0x4dc   :  { %v823_v49 = vpop.permute.xlu0 %822 }
 0x4dd   :  { %v825_v50 = vmul.f32 %v1225_v48, %v823_v49  ;;  %v872_v9 = vmul.f32 %v823_v49, %v1446_v28 }
 0x4df   :  { %v857_v51 = vrot.slane %v825_v50, 6  ;;  %v838_v37 = vmul.f32 %v1470_v59, %v825_v50  ;;  %v873_v1 = vmul.f32 %v825_v50, %v1452_v39 }
 0x4e1   :  { %v859_v52 = vmul.f32 %v857_v51, %v1446_v28  ;;  %v889_v5 = vrot.slane %v838_v37, 6  ;;  %v875_v6 = vrot.slane %v873_v1, 7  ;;  %v951_v22 = vmul.f32 %v885_v19, %v838_v37 }
 0x4e2   :  { %v826_v1 = vmul.f32 %v1452_v39, %v1452_v39 }
 0x4e3   :  { %861 = vrot.lane.b32.xlu0 %v859_v52, %s1238_s1  ;;  %v877_v2 = vadd.f32 %v875_v6, %v872_v9  ;;  %v831_v9 = vmul.f32 %v1446_v28, %v1446_v28 }
 0x4e5   :  { %v878_v11 = vmul.f32 2.0, %v877_v2 }
 0x4e7   :  { %818 = vrot.lane.b32.xlu0 %v1443_v27, %s1240_s11  ;;  %v932_v12 = vmul.f32 %v905_v10, %v878_v11 }
 0x4e9   :  { %v963_v24 = vrot.slane %v932_v12, 2 }
 0x504   :  { %v853_v53 = vpop.permute.xlu1 %852 }
 0x505   :  { %v855_v54 = vmul.f32 %v853_v53, %v1443_v27 }
 0x508   :  { %v954_v57 = vpop.permute.xlu1 %953 }
 0x555   :  { %v862_v55 = vpop.permute.xlu0 %861 }
 0x556   :  { %v864_v56 = vadd.f32 %v862_v55, %v855_v54 }
 0x558   :  { %921 = vrot.lane.b32.xlu1 %v864_v56, %s1241_s12  ;;  %v952_v58 = vmul.f32 2.0, %v864_v56 }
 0x559   :  { %v819_v60 = vpop.permute.xlu0 %818 }
 0x55a   :  { %v956_v61 = vmul.f32 %v954_v57, %v952_v58  ;;  %v1472_v62 = vmul.f32 %v1225_v48, %v819_v60  ;;  %v865_v14 = vmul.f32 %v819_v60, %v1446_v28  ;;  %v990_v48 = vrot.slane %v1443_v27, 6 }
 0x55c   :  { %v958_v3 = vrot.slane %v956_v61, 2  ;;  %839 = vrot.lane.b32.xlu1 %v1456_v41, %s1239_s18  ;;  %v844_v43 = vrot.slane %v1472_v62, 6  ;;  %v866_v0 = vmul.f32 %v1472_v62, %v1452_v39  ;;  %v837_v58 = vmul.f32 %v1470_v59, %v1472_v62 }
 0x55d   :  { %v830_v59 = vmul.f32 %v1456_v41, %v1446_v28 }
 0x55e   :  { %959 = vrot.lane.b32.xlu0 %v958_v3, %s1241_s12  ;;  %v846_v63 = vmul.f32 %v844_v43, %v1446_v28  ;;  %v868_v13 = vrot.slane %v866_v0, 7  ;;  %v887_v37 = vmul.f32 %v885_v19, %v837_v58 }
 0x55f   :  { %v999_v0 = vmul.f32 %v830_v59, %v830_v59 }
 0x560   :  { %890 = vrot.lane.b32.xlu1 %v889_v5, %s1239_s18  ;;  %v870_v15 = vadd.f32 %v868_v13, %v865_v14 }
 0x561   :  { %v1001_v14 = vrot.slane %v999_v0, 2 }
 0x562   :  { %848 = vrot.lane.b32.xlu0 %v846_v63, %s1239_s18  ;;  %v871_v16 = vmul.f32 2.0, %v870_v15  ;;  %v833_v63 = vrot.slane %v826_v1, 7  ;;  %v1228_v15 = vld [vmem:[%s1525_s0] sm:$0x3f] }
 0x564   :  { %906 = vrot.lane.b32.xlu1 %v905_v10, %s1238_s1  ;;  %v946_v61 = vmul.f32 %v905_v10, %v871_v16 }
 0x566   :  { %895 = vrot.lane.b32.xlu0 %v883_v42, %s1239_s18  ;;  %v948_v3 = vrot.slane %v946_v61, 2 }
 0x56a   :  { %916 = vrot.lane.b32.xlu0 %v1484_v7, %s1239_s18 }
 0x56e   :  { %934 = vrot.lane.b32.xlu0 %v932_v12, %s1239_s18  ;;  %v835_v12 = vadd.f32 %v833_v63, %v831_v9 }
 0x570   :  { %v996_v10 = vrot.slane %v835_v12, 2 }
 0x572   :  { %v998_v39 = vmul.f32 %v996_v10, %v826_v1 }
 0x5ca   :  { %v922_v17 = vpop.permute.xlu1 %921 }
 0x5cb   :  { %v924_v18 = vadd.f32 %v922_v17, %v871_v16  ;;  %v1003_v17 = vsub.f32 %v998_v39, %v1001_v14 }
 0x5cd   :  { %v925_v20 = vmul.f32 %v924_v18, %v883_v42  ;;  %1226 = vrcp.f32 %v1003_v17 }
 0x5ce   :  { %v840_v21 = vpop.permute.xlu1 %839 }
 0x5cf   :  { %927 = vrot.lane.b32.xlu1 %v925_v20, %s1239_s18  ;;  %v842_v26 = vmul.f32 %v840_v21, %v1443_v27 }
 0x5d0   :  { %v960_v23 = vpop.permute.xlu0 %959 }
 0x5d1   :  { %v962_v8 = vadd.f32 %v960_v23, %v951_v22 }
 0x5d2   :  { %v891_v25 = vpop.permute.xlu1 %890 }
 0x5d3   :  { %v965_v29 = vadd.f32 %v963_v24, %v962_v8 }
 0x5d4   :  { %v849_v30 = vpop.permute.xlu0 %848 }
 0x5d5   :  { %v968_v31 = vmul.f32 0.5, %v965_v29  ;;  %v851_v32 = vadd.f32 %v849_v30, %v842_v26 }
 0x5d6   :  { %v907_v36 = vpop.permute.xlu1 %906 }
 0x5d7   :  { %v970_v33 = vrot.slane %v968_v31, 6  ;;  %v938_v34 = vmul.f32 2.0, %v851_v32  ;;  %v893_v35 = vadd.f32 %v891_v25, %v851_v32  ;;  %v909_v42 = vmul.f32 %v907_v36, %v864_v56  ;;  %v1227_v25 = vpop.eup %1226 }
 0x5d8   :  { %v896_v4 = vpop.permute.xlu0 %895 }
 0x5d9   :  { %v898_v38 = vmul.f32 %v896_v4, %v893_v35  ;;  %v939_v40 = vmul.f32 %v938_v34, %v896_v4  ;;  %971 = vrot.lane.b32.xlu1 %v970_v33, %s1239_s18  ;;  %v911_v46 = vrot.slane %v909_v42, 2  ;;  %v1027_v33 = vrot.slane %v1228_v15, 2 }
 0x5db   :  { %v900_v44 = vrot.slane %v898_v38, 2  ;;  %v941_v45 = vrot.slane %v939_v40, 2 }
 0x5dc   :  { %v917_v49 = vpop.permute.xlu0 %916 }
 0x5dd   :  { %942 = vrot.lane.b32.xlu0 %v941_v45, %s1240_s11  ;;  %901 = vrot.lane.b32.xlu1 %v900_v44, %s1240_s11  ;;  %v919_v51 = vmul.f32 %v917_v49, %v851_v32  ;;  %v1015_v32 = vrot.slane %v1227_v25, 6 }
 0x5e0   :  { %v935_v53 = vpop.permute.xlu0 %934 }
 0x5e1   :  { %980 = vrot.lane.b32.xlu1 %v979_v47, %s1240_s11  ;;  %912 = vrot.lane.b32.xlu0 %v911_v46, %s1241_s12 }
 0x5e5   :  { %991 = vrot.lane.b32.xlu1 %v990_v48, %s1241_s12 }
 0x641   :  { %v928_v50 = vpop.permute.xlu1 %927 }
 0x642   :  { %v930_v52 = vadd.f32 %v928_v50, %v919_v51 }
 0x644   :  { %v937_v54 = vadd.f32 %v935_v53, %v930_v52 }
 0x64b   :  { %v972_v55 = vpop.permute.xlu1 %971 }
 0x64c   :  { %v974_v56 = vsub.f32 %v937_v54, %v972_v55 }
 0x64e   :  { %v985_v57 = vrot.slane %v974_v56, 5 }
 0x64f   :  { %v943_v60 = vpop.permute.xlu0 %942  ;;  %v902_v43 = vpop.permute.xlu1 %901 }
 0x650   :  { %986 = vrot.lane.b32.xlu0 %v985_v57, %s1240_s11  ;;  %v945_v27 = vadd.f32 %v943_v60, %v887_v37  ;;  %v904_v7 = vadd.f32 %v902_v43, %v887_v37 }
 0x652   :  { %v950_v5 = vadd.f32 %v948_v3, %v945_v27 }
 0x653   :  { %v913_v6 = vpop.permute.xlu0 %912  ;;  %v981_v18 = vpop.permute.xlu1 %980 }
 0x654   :  { %v966_v2 = vmul.f32 0.5, %v950_v5  ;;  %v915_v11 = vadd.f32 %v913_v6, %v904_v7 }
 0x656   :  { %v967_v62 = vsub.f32 %v915_v11, %v966_v2 }
 0x657   :  { %v992_v23 = vpop.permute.xlu1 %991 }
 0x658   :  { %v976_v13 = vrot.slane %v967_v62, 4 }
 0x65a   :  { %v978_v16 = vsub.f32 %v1228_v15, %v976_v13 }
 0x65c   :  { %v983_v19 = vsub.f32 %v978_v16, %v981_v18 }
 0x65e   :  { %v1006_v20 = vrot.slane %v983_v19, 2 }
 0x660   :  { %v1021_v28 = vmul.f32 %v1006_v20, %v830_v59  ;;  %v1008_v26 = vmul.f32 %v1006_v20, %v835_v12 }
 0x662   :  { %v1023_v29 = vrot.slane %v1021_v28, 2 }
 0x6c2   :  { %v987_v21 = vpop.permute.xlu0 %986 }
 0x6c3   :  { %v989_v22 = vsub.f32 %v1228_v15, %v987_v21 }
 0x6c5   :  { %v994_v41 = vsub.f32 %v989_v22, %v992_v23 }
 0x6c7   :  { %v1010_v24 = vrot.slane %v994_v41, 3  ;;  %v1018_v8 = vrot.slane %v994_v41, 5 }
 0x6c9   :  { %v1012_v30 = vmul.f32 %v1010_v24, %v830_v59  ;;  %v1020_v31 = vmul.f32 %v1018_v8, %v826_v1 }
 0x6cb   :  { %v1013_v34 = vsub.f32 %v1008_v26, %v1012_v30  ;;  %v1025_v35 = vsub.f32 %v1020_v31, %v1023_v29 }
 0x6cd   :  { %v1017_v36 = vmul.f32 %v1015_v32, %v1013_v34  ;;  %v1026_v4 = vmul.f32 %v1227_v25, %v1025_v35 }
 0x6cf   :  { %v1030_v38 = vrot.slane %v1026_v4, 5  ;;  %v1032_v40 = vsel %vm239_vm3, %v1027_v33, %v1017_v36 }
 0x6d1   :  { %v1033_v42 = vsel %vm282_vm4, %v1032_v40, %v1030_v38 }
 0x6d2   :  { %v1035_v44 = vsel %vm1034_vm8, %v1033_v42, 0.0 }
 0x6d3   :  { %v1037_v45 = vsel %vm1036_vm9, %v1035_v44, 0.0 }
 0x6d4   :  { %1039 = vst.msk [vmem:[%s1532_s7] sm:$0x3f] %vm1038_vm10, %v1037_v45 }

</bundles_post_ra>
